<compile_context>
chip_gen: v6e
topology: v6e:2x2x1
jax: 0.10.0
libtpu: 0.0.40
codegen_flags: <defaults>
</compile_context>

<pallas_src>
import functools

import jax
import jax.numpy as jnp
from jax import lax
from jax.experimental import pallas as pl
from jax.experimental.pallas import tpu as pltpu


def _round_up(x, m):
    return (x + m - 1) // m * m


def _pick_batch_block(n):
    """Amortize per-grid-step overhead but keep >=2 grid steps (v7x megacore)."""
    for bb in (8, 4, 2):
        if n % bb == 0 and (n // bb) >= 2:
            return bb
    return 1


def _bilinear_matrix(in_size, scale, align_corners):
    """(in_size*scale, in_size) bilinear interpolation matrix."""
    out_size = in_size * scale
    j = jnp.arange(out_size, dtype=jnp.float32)
    if align_corners:
        if out_size == 1:
            src = jnp.zeros_like(j)
        else:
            src = j * (in_size - 1) / (out_size - 1)
    else:
        src = jnp.maximum((j + 0.5) / scale - 0.5, 0.0)
    f0 = jnp.floor(src)
    frac = src - f0
    i0 = f0.astype(jnp.int32)
    i1 = jnp.minimum(i0 + 1, in_size - 1)
    rows = jnp.arange(out_size)
    u = jnp.zeros((out_size, in_size), jnp.float32)
    u = u.at[rows, i0].add(1.0 - frac)
    u = u.at[rows, i1].add(frac)
    return u


# ----------------------------- Pallas kernel --------------------------------


def _fusion_kernel(*refs, n_paths, batch_block, conv_rows):
    """Per grid step: for each of `batch_block` images, sum over paths of
    width-upsample(row-upsample(conv3x3(x))) plus a folded bias row.
    Everything is a lane-dense 2-D matmul on VMEM-resident operands."""
    bias = refs[4 * n_paths][...]                    # (1, WC_out_pad) f32
    o_ref = refs[4 * n_paths + 1]

    for b in range(batch_block):
        acc = None
        for p in range(n_paths):
            x_ref, wb_ref, uh_ref, bw_ref = refs[4 * p: 4 * p + 4]
            hc = conv_rows[p]                        # padded conv-output rows
            x = x_ref[b]                             # (H_in_pad, WC_in_pad) bf16

            # 3x3 VALID conv as ONE MXU contraction of depth 3*WC_in_pad:
            # LHS row r = concat_dy x[r+dy, :]; w_band rows follow that layout.
            lhs = jnp.concatenate([x[0:hc], x[1:1 + hc], x[2:2 + hc]], axis=1)
            conv = jnp.dot(lhs, wb_ref[...],
                           preferred_element_type=jnp.float32)

            # Bilinear upsample: rows from the left, width(+channels) from the
            # right (kron(Uw^T, I_C)) -- no gathers, no reshapes.
            rowup = jnp.dot(uh_ref[...], conv.astype(jnp.bfloat16),
                            preferred_element_type=jnp.float32)
            up = jnp.dot(rowup.astype(jnp.bfloat16), bw_ref[...],
                         preferred_element_type=jnp.float32)
            acc = up if acc is None else acc + up

        o_ref[b] = (acc + bias).astype(o_ref.dtype)


# ------------------------------ Module wrapper --------------------------------


class MultiResolutionFusion:
    """Pallas-TPU port of ptsemseg multiResolutionFusion.

    Conv2d(kernel_size=3) with default padding=0 (VALID) and bias=True, then
    bilinear upsample (align_corners=False, current F.upsample/interpolate
    default) and sum of the two paths.  All static operator matrices are built
    once here (nothing is rebuilt per call)."""

    def __init__(self, channels, up_scale_high, up_scale_low, high_shape,
                 low_shape, w_high, b_high, w_low=None, b_low=None, *,
                 align_corners=False, batch_block=None):
        self.channels = channels
        self.align_corners = align_corners
        self.batch_block = batch_block

        _, c_h, h_h, w_h = high_shape
        self.h_out = (h_h - 2) * up_scale_high
        self.w_out = (w_h - 2) * up_scale_high
        self.wc_out = self.w_out * channels
        self.wc_out_pad = _round_up(self.wc_out, 128)

        self._paths = []        # [(meta, {"w_band","u_h","b_w"}), ...]
        self._bias_rows = []    # per-path folded (1, WC_out_pad) f32 bias rows
        self._add_path(w_high, b_high, c_h, h_h, w_h, up_scale_high)
        if low_shape is not None:
            _, c_l, h_l, w_l = low_shape
            self._add_path(w_low, b_low, c_l, h_l, w_l, up_scale_low)

        # jit once; operator matrices are captured as compile-time constants.
        self.forward = jax.jit(self._forward_nchw)       # NCHW in / NCHW out
        self.forward_nhwc = jax.jit(self._forward_nhwc)  # channels-last fast path

    # ---- static operator-matrix construction (runs once) --------------------

    def _add_path(self, weight, bias, c_in, h_in, w_in, scale):
        channels = self.channels
        h_c, w_c = h_in - 2, w_in - 2
        assert h_c * scale == self.h_out and w_c * scale == self.w_out, \
            "high/low paths must upsample to the same spatial size"

        wc_in = w_in * c_in
        wc_in_pad = _round_up(wc_in, 8)        # sublane-aligned K blocks
        h_c_pad = _round_up(h_c, 8)            # sublane-pad conv rows
        wc_mid = w_c * channels
        wc_mid_pad = _round_up(wc_mid, 128)    # lane-pad conv output
        wc_out_pad = self.wc_out_pad

        w = jnp.asarray(weight, jnp.float32)   # (C_out, C_in, 3, 3)

        # Fused banded conv matrix:
        #   w_band[dy*WC_in_pad + xw*C_in + ci, q*C + co] = w[co, ci, dy, xw-q]
        shift = jnp.stack([jnp.eye(w_in, w_c, k=-dx, dtype=jnp.float32)
                           for dx in range(3)])                   # (dx, xw, q)
        band = jnp.einsum("xwq,oiyx->ywiqo", shift, w)
        band = band.reshape(3, wc_in, wc_mid)
        band = jnp.pad(band, ((0, 0), (0, wc_in_pad - wc_in),
                              (0, wc_mid_pad - wc_mid)))
        w_band = band.reshape(3 * wc_in_pad, wc_mid_pad).astype(jnp.bfloat16)

        # Row upsample (left matmul) and width+channel upsample (right matmul).
        u_h = _bilinear_matrix(h_c, scale, self.align_corners)    # (H_out, h_c)
        u_h = jnp.pad(u_h, ((0, 0), (0, h_c_pad - h_c))).astype(jnp.bfloat16)
        u_w = _bilinear_matrix(w_c, scale, self.align_corners)    # (W_out, w_c)
        b_w = jnp.einsum("jq,cd->qcjd", u_w,
                         jnp.eye(channels, dtype=jnp.float32))
        b_w = b_w.reshape(wc_mid, self.wc_out)
        b_w = jnp.pad(b_w, ((0, wc_mid_pad - wc_mid),
                            (0, wc_out_pad - self.wc_out))).astype(jnp.bfloat16)

        # Fold the conv bias into a single output row (bilinear weights sum to
        # 1, so a per-channel constant commutes with the upsample).
        bias_row = jnp.tile(jnp.asarray(bias, jnp.float32), (self.w_out,))
        bias_row = jnp.pad(bias_row, (0, wc_out_pad - self.wc_out))
        bias_row = bias_row.reshape(1, wc_out_pad)

        meta = dict(c_in=c_in, h_in=h_in, w_in=w_in, wc_in=wc_in,
                    wc_in_pad=wc_in_pad, h_c_pad=h_c_pad,
                    h_in_pad=h_c_pad + 2)
        self._paths.append((meta, dict(w_band=w_band, u_h=u_h, b_w=b_w)))
        self._bias_rows.append(bias_row)

    # ---- forward ------------------------------------------------------------

    @staticmethod
    def _to_flat(x_nhwc, meta):
        """NHWC -> (N, H_in_pad, WC_in_pad) bf16 (channels packed on lanes)."""
        n, h, w, c = x_nhwc.shape
        x = x_nhwc.reshape(n, h, w * c).astype(jnp.bfloat16)
        return jnp.pad(x, ((0, 0), (0, meta["h_in_pad"] - h),
                           (0, meta["wc_in_pad"] - w * c)))

    def _forward_flat(self, xs_flat):
        n_paths = len(xs_flat)
        n = xs_flat[0].shape[0]
        bb = self.batch_block or _pick_batch_block(n)
        if n % bb:
            bb = 1
        grid = (n // bb,)

        bias = self._bias_rows[0]
        for r in self._bias_rows[1:n_paths]:
            bias = bias + r

        in_specs, args, conv_rows = [], [], []
        for p in range(n_paths):
            meta, ops = self._paths[p]
            x = xs_flat[p]
            in_specs.append(pl.BlockSpec((bb,) + x.shape[1:],
                                         lambda i: (i, 0, 0)))
            args.append(x)
            for name in ("w_band", "u_h", "b_w"):
                in_specs.append(pl.BlockSpec(ops[name].shape,
                                             lambda i: (0, 0)))
                args.append(ops[name])
            conv_rows.append(meta["h_c_pad"])
        in_specs.append(pl.BlockSpec(bias.shape, lambda i: (0, 0)))
        args.append(bias)

        return pl.pallas_call(
            functools.partial(_fusion_kernel, n_paths=n_paths,
                              batch_block=bb, conv_rows=tuple(conv_rows)),
            out_shape=jax.ShapeDtypeStruct((n, self.h_out, self.wc_out_pad),
                                           jnp.float32),
            grid_spec=pltpu.PrefetchScalarGridSpec(
                num_scalar_prefetch=0,
                grid=grid,
                in_specs=in_specs,
                out_specs=pl.BlockSpec((bb, self.h_out, self.wc_out_pad),
                                       lambda i: (i, 0, 0)),
            ),
            compiler_params=pltpu.CompilerParams(
                dimension_semantics=("parallel",),
                vmem_limit_bytes=64 * 1024 * 1024,
            ),
        )(*args)

    def _forward_nhwc(self, x_high_nhwc, x_low_nhwc=None):
        xs = [self._to_flat(x_high_nhwc, self._paths[0][0])]
        if x_low_nhwc is not None:
            xs.append(self._to_flat(x_low_nhwc, self._paths[1][0]))
        flat = self._forward_flat(tuple(xs))
        out = flat[:, :, :self.wc_out]
        return out.reshape(out.shape[0], self.h_out, self.w_out, self.channels)

    def _forward_nchw(self, x_high, x_low=None):
        # TODO(synk): keep the surrounding model channels-last and call
        # forward_nhwc directly to avoid these two full-tensor HBM layout passes.
        xh = jnp.transpose(x_high, (0, 2, 3, 1))
        xl = None if x_low is None else jnp.transpose(x_low, (0, 2, 3, 1))
        out = self._forward_nhwc(xh, xl)
        return jnp.transpose(out, (0, 3, 1, 2))

    def __call__(self, x_high, x_low=None):
        return self.forward(x_high, x_low)


# --------------------------------- Main ---------------------------------------


if __name__ == "__main__":
    channels = 8
    s_high, s_low = 2, 4
    key = jax.random.PRNGKey(0)
    k1, k2, k3, k4, k5, k6 = jax.random.split(key, 6)
    # batch=4 so the kernel runs with 2 images per grid step (grid length 2).
    x_high = jax.random.normal(k1, (4, 4, 16, 16), jnp.float32)  # conv 14x14 -> x2 = 28x28
    x_low = jax.random.normal(k2, (4, 6, 9, 9), jnp.float32)     # conv 7x7   -> x4 = 28x28
    w_high = 0.2 * jax.random.normal(k3, (channels, 4, 3, 3), jnp.float32)
    b_high = 0.1 * jax.random.normal(k4, (channels,), jnp.float32)
    w_low = 0.2 * jax.random.normal(k5, (channels, 6, 3, 3), jnp.float32)
    b_low = 0.1 * jax.random.normal(k6, (channels,), jnp.float32)

    fusion = MultiResolutionFusion(
        channels, s_high, s_low, x_high.shape, x_low.shape,
        w_high, b_high, w_low, b_low)

    out = jax.block_until_ready(fusion(x_high, x_low))

    # ---- pure-JAX f32 reference (independent implementation) ----------------
    def ref_conv3x3_valid(x, w, b):
        y = lax.conv_general_dilated(
            x, w, window_strides=(1, 1), padding="VALID",
            dimension_numbers=("NCHW", "OIHW", "NCHW"),
            precision=lax.Precision.HIGHEST)
        return y + b[None, :, None, None]

    def ref_bilinear_up(x, scale):   # PyTorch bilinear, align_corners=False
        n, c, h, w = x.shape
        def coords(out_len, in_len):
            s = jnp.maximum(
                (jnp.arange(out_len, dtype=jnp.float32) + 0.5) / scale - 0.5, 0.0)
            f0 = jnp.floor(s)
            frac = s - f0
            lo = f0.astype(jnp.int32)
            hi = jnp.minimum(lo + 1, in_len - 1)
            return lo, hi, frac
        y0, y1, fy = coords(h * scale, h)
        x0, x1, fx = coords(w * scale, w)
        top = (x[:, :, y0, :] * (1 - fy)[None, None, :, None]
               + x[:, :, y1, :] * fy[None, None, :, None])
        return top[:, :, :, x0] * (1 - fx) + top[:, :, :, x1] * fx

    conv_h = ref_conv3x3_valid(x_high, w_high, b_high)
    conv_l = ref_conv3x3_valid(x_low, w_low, b_low)
    ref = ref_bilinear_up(conv_h, s_high) + ref_bilinear_up(conv_l, s_low)

    assert out.shape == (4, channels, 28, 28), out.shape
    # bf16 MXU operands with f32 accumulation -> loosened tolerance.
    assert jnp.allclose(out, ref, atol=1e-1, rtol=5e-2), \
        float(jnp.max(jnp.abs(out - ref)))

    # x_low is None branch (module returns just the upsampled high path).
    out_high = jax.block_until_ready(fusion(x_high, None))
    ref_high = ref_bilinear_up(conv_h, s_high)
    assert jnp.allclose(out_high, ref_high, atol=1e-1, rtol=5e-2), \
        float(jnp.max(jnp.abs(out_high - ref_high)))

    print("KERNEL_OK")
</pallas_src>

<mosaic_0001>
module attributes {stable_mosaic.version = 11 : i64} {
  func.func @_fusion_kernel(%arg0: i32, %arg1: memref<2x18x64xbf16, #tpu.memory_space<vmem>>, %arg2: memref<192x128xbf16, #tpu.memory_space<vmem>>, %arg3: memref<28x16xbf16, #tpu.memory_space<vmem>>, %arg4: memref<128x256xbf16, #tpu.memory_space<vmem>>, %arg5: memref<2x10x56xbf16, #tpu.memory_space<vmem>>, %arg6: memref<168x128xbf16, #tpu.memory_space<vmem>>, %arg7: memref<28x8xbf16, #tpu.memory_space<vmem>>, %arg8: memref<128x256xbf16, #tpu.memory_space<vmem>>, %arg9: memref<1x256xf32, #tpu.memory_space<vmem>>, %arg10: memref<2x28x256xf32, #tpu.memory_space<vmem>>) attributes {dimension_semantics = [#tpu.dimension_semantics<parallel>], iteration_bounds = array<i64: 2>, scalar_prefetch = 0 : i64, scratch_operands = 0 : i64, tpu.core_type = #tpu.core_type<tc>, window_params = [{transform_indices = @transform_0, window_bounds = array<i64: 2, 18, 64>}, {pipeline_mode = #tpu.pipeline_mode<synchronous>, transform_indices = @transform_1, window_bounds = array<i64: 192, 128>}, {pipeline_mode = #tpu.pipeline_mode<synchronous>, transform_indices = @transform_2, window_bounds = array<i64: 28, 16>}, {pipeline_mode = #tpu.pipeline_mode<synchronous>, transform_indices = @transform_3, window_bounds = array<i64: 128, 256>}, {transform_indices = @transform_4, window_bounds = array<i64: 2, 10, 56>}, {pipeline_mode = #tpu.pipeline_mode<synchronous>, transform_indices = @transform_5, window_bounds = array<i64: 168, 128>}, {pipeline_mode = #tpu.pipeline_mode<synchronous>, transform_indices = @transform_6, window_bounds = array<i64: 28, 8>}, {pipeline_mode = #tpu.pipeline_mode<synchronous>, transform_indices = @transform_7, window_bounds = array<i64: 128, 256>}, {pipeline_mode = #tpu.pipeline_mode<synchronous>, transform_indices = @transform_8, window_bounds = array<i64: 1, 256>}, {transform_indices = @transform_9, window_bounds = array<i64: 2, 28, 256>}]} {
    %c0 = arith.constant 0 : index
    %c0_0 = arith.constant 0 : index
    %0 = vector.load %arg9[%c0, %c0_0] : memref<1x256xf32, #tpu.memory_space<vmem>>, vector<1x256xf32>
    %c0_1 = arith.constant 0 : index
    %c0_2 = arith.constant 0 : index
    %c0_3 = arith.constant 0 : index
    %1 = vector.load %arg1[%c0_1, %c0_2, %c0_3] : memref<2x18x64xbf16, #tpu.memory_space<vmem>>, vector<1x18x64xbf16>
    %2 = vector.shape_cast %1 : vector<1x18x64xbf16> to vector<18x64xbf16>
    %3 = vector.extract_strided_slice %2 {offsets = [0, 0], sizes = [16, 64], strides = [1, 1]} : vector<18x64xbf16> to vector<16x64xbf16>
    %4 = vector.extract_strided_slice %2 {offsets = [1, 0], sizes = [16, 64], strides = [1, 1]} : vector<18x64xbf16> to vector<16x64xbf16>
    %5 = vector.extract_strided_slice %2 {offsets = [2, 0], sizes = [16, 64], strides = [1, 1]} : vector<18x64xbf16> to vector<16x64xbf16>
    %6 = tpu.concatenate %3, %4, %5 in 1 : vector<16x64xbf16>, vector<16x64xbf16>, vector<16x64xbf16> -> vector<16x192xbf16>
    %c0_4 = arith.constant 0 : index
    %c0_5 = arith.constant 0 : index
    %7 = vector.load %arg2[%c0_4, %c0_5] : memref<192x128xbf16, #tpu.memory_space<vmem>>, vector<192x128xbf16>
    %cst = arith.constant dense<0.000000e+00> : vector<16x128xf32>
    %8 = tpu.matmul %6, %7, %cst {dimension_numbers = #tpu.dot_dimension_numbers<[1], [0], [0], [1], [0, 0, 1, 1], [], []>} : vector<16x192xbf16>, vector<192x128xbf16>, vector<16x128xf32> -> vector<16x128xf32>
    %c0_6 = arith.constant 0 : index
    %c0_7 = arith.constant 0 : index
    %9 = vector.load %arg3[%c0_6, %c0_7] : memref<28x16xbf16, #tpu.memory_space<vmem>>, vector<28x16xbf16>
    %10 = arith.truncf %8 : vector<16x128xf32> to vector<16x128xbf16>
    %cst_8 = arith.constant dense<0.000000e+00> : vector<28x128xf32>
    %11 = tpu.matmul %9, %10, %cst_8 {dimension_numbers = #tpu.dot_dimension_numbers<[1], [0], [0], [1], [0, 0, 1, 1], [], []>} : vector<28x16xbf16>, vector<16x128xbf16>, vector<28x128xf32> -> vector<28x128xf32>
    %12 = arith.truncf %11 : vector<28x128xf32> to vector<28x128xbf16>
    %c0_9 = arith.constant 0 : index
    %c0_10 = arith.constant 0 : index
    %13 = vector.load %arg4[%c0_9, %c0_10] : memref<128x256xbf16, #tpu.memory_space<vmem>>, vector<128x256xbf16>
    %cst_11 = arith.constant dense<0.000000e+00> : vector<28x256xf32>
    %14 = tpu.matmul %12, %13, %cst_11 {dimension_numbers = #tpu.dot_dimension_numbers<[1], [0], [0], [1], [0, 0, 1, 1], [], []>} : vector<28x128xbf16>, vector<128x256xbf16>, vector<28x256xf32> -> vector<28x256xf32>
    %c0_12 = arith.constant 0 : index
    %c0_13 = arith.constant 0 : index
    %c0_14 = arith.constant 0 : index
    %15 = vector.load %arg5[%c0_12, %c0_13, %c0_14] : memref<2x10x56xbf16, #tpu.memory_space<vmem>>, vector<1x10x56xbf16>
    %16 = vector.shape_cast %15 : vector<1x10x56xbf16> to vector<10x56xbf16>
    %17 = vector.extract_strided_slice %16 {offsets = [0, 0], sizes = [8, 56], strides = [1, 1]} : vector<10x56xbf16> to vector<8x56xbf16>
    %18 = vector.extract_strided_slice %16 {offsets = [1, 0], sizes = [8, 56], strides = [1, 1]} : vector<10x56xbf16> to vector<8x56xbf16>
    %19 = vector.extract_strided_slice %16 {offsets = [2, 0], sizes = [8, 56], strides = [1, 1]} : vector<10x56xbf16> to vector<8x56xbf16>
    %20 = tpu.concatenate %17, %18, %19 in 1 : vector<8x56xbf16>, vector<8x56xbf16>, vector<8x56xbf16> -> vector<8x168xbf16>
    %c0_15 = arith.constant 0 : index
    %c0_16 = arith.constant 0 : index
    %21 = vector.load %arg6[%c0_15, %c0_16] : memref<168x128xbf16, #tpu.memory_space<vmem>>, vector<168x128xbf16>
    %cst_17 = arith.constant dense<0.000000e+00> : vector<8x128xf32>
    %22 = tpu.matmul %20, %21, %cst_17 {dimension_numbers = #tpu.dot_dimension_numbers<[1], [0], [0], [1], [0, 0, 1, 1], [], []>} : vector<8x168xbf16>, vector<168x128xbf16>, vector<8x128xf32> -> vector<8x128xf32>
    %c0_18 = arith.constant 0 : index
    %c0_19 = arith.constant 0 : index
    %23 = vector.load %arg7[%c0_18, %c0_19] : memref<28x8xbf16, #tpu.memory_space<vmem>>, vector<28x8xbf16>
    %24 = arith.truncf %22 : vector<8x128xf32> to vector<8x128xbf16>
    %cst_20 = arith.constant dense<0.000000e+00> : vector<28x128xf32>
    %25 = tpu.matmul %23, %24, %cst_20 {dimension_numbers = #tpu.dot_dimension_numbers<[1], [0], [0], [1], [0, 0, 1, 1], [], []>} : vector<28x8xbf16>, vector<8x128xbf16>, vector<28x128xf32> -> vector<28x128xf32>
    %26 = arith.truncf %25 : vector<28x128xf32> to vector<28x128xbf16>
    %c0_21 = arith.constant 0 : index
    %c0_22 = arith.constant 0 : index
    %27 = vector.load %arg8[%c0_21, %c0_22] : memref<128x256xbf16, #tpu.memory_space<vmem>>, vector<128x256xbf16>
    %cst_23 = arith.constant dense<0.000000e+00> : vector<28x256xf32>
    %28 = tpu.matmul %26, %27, %cst_23 {dimension_numbers = #tpu.dot_dimension_numbers<[1], [0], [0], [1], [0, 0, 1, 1], [], []>} : vector<28x128xbf16>, vector<128x256xbf16>, vector<28x256xf32> -> vector<28x256xf32>
    %29 = arith.addf %14, %28 : vector<28x256xf32>
    %30 = vector.broadcast %0 : vector<1x256xf32> to vector<28x256xf32>
    %31 = arith.addf %29, %30 : vector<28x256xf32>
    %c0_24 = arith.constant 0 : index
    %c0_25 = arith.constant 0 : index
    %c0_26 = arith.constant 0 : index
    %32 = vector.load %arg10[%c0_24, %c0_25, %c0_26] : memref<2x28x256xf32, #tpu.memory_space<vmem>>, vector<1x28x256xf32>
    %33 = vector.shape_cast %32 : vector<1x28x256xf32> to vector<28x256xf32>
    %34 = vector.shape_cast %31 : vector<28x256xf32> to vector<1x28x256xf32>
    tpu.vector_store %arg10[%c0_24, %c0_25, %c0_26], %34 {strides = array<i32>} : memref<2x28x256xf32, #tpu.memory_space<vmem>>, vector<1x28x256xf32>,
    %c1 = arith.constant 1 : index
    %c0_27 = arith.constant 0 : index
    %c0_28 = arith.constant 0 : index
    %35 = vector.load %arg1[%c1, %c0_27, %c0_28] : memref<2x18x64xbf16, #tpu.memory_space<vmem>>, vector<1x18x64xbf16>
    %36 = vector.shape_cast %35 : vector<1x18x64xbf16> to vector<18x64xbf16>
    %37 = vector.extract_strided_slice %36 {offsets = [0, 0], sizes = [16, 64], strides = [1, 1]} : vector<18x64xbf16> to vector<16x64xbf16>
    %38 = vector.extract_strided_slice %36 {offsets = [1, 0], sizes = [16, 64], strides = [1, 1]} : vector<18x64xbf16> to vector<16x64xbf16>
    %39 = vector.extract_strided_slice %36 {offsets = [2, 0], sizes = [16, 64], strides = [1, 1]} : vector<18x64xbf16> to vector<16x64xbf16>
    %40 = tpu.concatenate %37, %38, %39 in 1 : vector<16x64xbf16>, vector<16x64xbf16>, vector<16x64xbf16> -> vector<16x192xbf16>
    %c0_29 = arith.constant 0 : index
    %c0_30 = arith.constant 0 : index
    %41 = vector.load %arg2[%c0_29, %c0_30] : memref<192x128xbf16, #tpu.memory_space<vmem>>, vector<192x128xbf16>
    %cst_31 = arith.constant dense<0.000000e+00> : vector<16x128xf32>
    %42 = tpu.matmul %40, %41, %cst_31 {dimension_numbers = #tpu.dot_dimension_numbers<[1], [0], [0], [1], [0, 0, 1, 1], [], []>} : vector<16x192xbf16>, vector<192x128xbf16>, vector<16x128xf32> -> vector<16x128xf32>
    %c0_32 = arith.constant 0 : index
    %c0_33 = arith.constant 0 : index
    %43 = vector.load %arg3[%c0_32, %c0_33] : memref<28x16xbf16, #tpu.memory_space<vmem>>, vector<28x16xbf16>
    %44 = arith.truncf %42 : vector<16x128xf32> to vector<16x128xbf16>
    %cst_34 = arith.constant dense<0.000000e+00> : vector<28x128xf32>
    %45 = tpu.matmul %43, %44, %cst_34 {dimension_numbers = #tpu.dot_dimension_numbers<[1], [0], [0], [1], [0, 0, 1, 1], [], []>} : vector<28x16xbf16>, vector<16x128xbf16>, vector<28x128xf32> -> vector<28x128xf32>
    %46 = arith.truncf %45 : vector<28x128xf32> to vector<28x128xbf16>
    %c0_35 = arith.constant 0 : index
    %c0_36 = arith.constant 0 : index
    %47 = vector.load %arg4[%c0_35, %c0_36] : memref<128x256xbf16, #tpu.memory_space<vmem>>, vector<128x256xbf16>
    %cst_37 = arith.constant dense<0.000000e+00> : vector<28x256xf32>
    %48 = tpu.matmul %46, %47, %cst_37 {dimension_numbers = #tpu.dot_dimension_numbers<[1], [0], [0], [1], [0, 0, 1, 1], [], []>} : vector<28x128xbf16>, vector<128x256xbf16>, vector<28x256xf32> -> vector<28x256xf32>
    %c1_38 = arith.constant 1 : index
    %c0_39 = arith.constant 0 : index
    %c0_40 = arith.constant 0 : index
    %49 = vector.load %arg5[%c1_38, %c0_39, %c0_40] : memref<2x10x56xbf16, #tpu.memory_space<vmem>>, vector<1x10x56xbf16>
    %50 = vector.shape_cast %49 : vector<1x10x56xbf16> to vector<10x56xbf16>
    %51 = vector.extract_strided_slice %50 {offsets = [0, 0], sizes = [8, 56], strides = [1, 1]} : vector<10x56xbf16> to vector<8x56xbf16>
    %52 = vector.extract_strided_slice %50 {offsets = [1, 0], sizes = [8, 56], strides = [1, 1]} : vector<10x56xbf16> to vector<8x56xbf16>
    %53 = vector.extract_strided_slice %50 {offsets = [2, 0], sizes = [8, 56], strides = [1, 1]} : vector<10x56xbf16> to vector<8x56xbf16>
    %54 = tpu.concatenate %51, %52, %53 in 1 : vector<8x56xbf16>, vector<8x56xbf16>, vector<8x56xbf16> -> vector<8x168xbf16>
    %c0_41 = arith.constant 0 : index
    %c0_42 = arith.constant 0 : index
    %55 = vector.load %arg6[%c0_41, %c0_42] : memref<168x128xbf16, #tpu.memory_space<vmem>>, vector<168x128xbf16>
    %cst_43 = arith.constant dense<0.000000e+00> : vector<8x128xf32>
    %56 = tpu.matmul %54, %55, %cst_43 {dimension_numbers = #tpu.dot_dimension_numbers<[1], [0], [0], [1], [0, 0, 1, 1], [], []>} : vector<8x168xbf16>, vector<168x128xbf16>, vector<8x128xf32> -> vector<8x128xf32>
    %c0_44 = arith.constant 0 : index
    %c0_45 = arith.constant 0 : index
    %57 = vector.load %arg7[%c0_44, %c0_45] : memref<28x8xbf16, #tpu.memory_space<vmem>>, vector<28x8xbf16>
    %58 = arith.truncf %56 : vector<8x128xf32> to vector<8x128xbf16>
    %cst_46 = arith.constant dense<0.000000e+00> : vector<28x128xf32>
    %59 = tpu.matmul %57, %58, %cst_46 {dimension_numbers = #tpu.dot_dimension_numbers<[1], [0], [0], [1], [0, 0, 1, 1], [], []>} : vector<28x8xbf16>, vector<8x128xbf16>, vector<28x128xf32> -> vector<28x128xf32>
    %60 = arith.truncf %59 : vector<28x128xf32> to vector<28x128xbf16>
    %c0_47 = arith.constant 0 : index
    %c0_48 = arith.constant 0 : index
    %61 = vector.load %arg8[%c0_47, %c0_48] : memref<128x256xbf16, #tpu.memory_space<vmem>>, vector<128x256xbf16>
    %cst_49 = arith.constant dense<0.000000e+00> : vector<28x256xf32>
    %62 = tpu.matmul %60, %61, %cst_49 {dimension_numbers = #tpu.dot_dimension_numbers<[1], [0], [0], [1], [0, 0, 1, 1], [], []>} : vector<28x128xbf16>, vector<128x256xbf16>, vector<28x256xf32> -> vector<28x256xf32>
    %63 = arith.addf %48, %62 : vector<28x256xf32>
    %64 = vector.broadcast %0 : vector<1x256xf32> to vector<28x256xf32>
    %65 = arith.addf %63, %64 : vector<28x256xf32>
    %c1_50 = arith.constant 1 : index
    %c0_51 = arith.constant 0 : index
    %c0_52 = arith.constant 0 : index
    %66 = vector.load %arg10[%c1_50, %c0_51, %c0_52] : memref<2x28x256xf32, #tpu.memory_space<vmem>>, vector<1x28x256xf32>
    %67 = vector.shape_cast %66 : vector<1x28x256xf32> to vector<28x256xf32>
    %68 = vector.shape_cast %65 : vector<28x256xf32> to vector<1x28x256xf32>
    tpu.vector_store %arg10[%c1_50, %c0_51, %c0_52], %68 {strides = array<i32>} : memref<2x28x256xf32, #tpu.memory_space<vmem>>, vector<1x28x256xf32>,
    return
  }
  func.func @transform_0(%arg0: i32) -> (i32, i32, i32) {
    %c0_i32 = arith.constant 0 : i32
    %c0_i32_0 = arith.constant 0 : i32
    %c0_i32_1 = arith.constant 0 : i32
    return %arg0, %c0_i32, %c0_i32_0 : i32, i32, i32
  }
  func.func @transform_1(%arg0: i32) -> (i32, i32) {
    %c0_i32 = arith.constant 0 : i32
    %c0_i32_0 = arith.constant 0 : i32
    %c0_i32_1 = arith.constant 0 : i32
    return %c0_i32, %c0_i32_0 : i32, i32
  }
  func.func @transform_2(%arg0: i32) -> (i32, i32) {
    %c0_i32 = arith.constant 0 : i32
    %c0_i32_0 = arith.constant 0 : i32
    %c0_i32_1 = arith.constant 0 : i32
    return %c0_i32, %c0_i32_0 : i32, i32
  }
  func.func @transform_3(%arg0: i32) -> (i32, i32) {
    %c0_i32 = arith.constant 0 : i32
    %c0_i32_0 = arith.constant 0 : i32
    %c0_i32_1 = arith.constant 0 : i32
    return %c0_i32, %c0_i32_0 : i32, i32
  }
  func.func @transform_4(%arg0: i32) -> (i32, i32, i32) {
    %c0_i32 = arith.constant 0 : i32
    %c0_i32_0 = arith.constant 0 : i32
    %c0_i32_1 = arith.constant 0 : i32
    return %arg0, %c0_i32, %c0_i32_0 : i32, i32, i32
  }
  func.func @transform_5(%arg0: i32) -> (i32, i32) {
    %c0_i32 = arith.constant 0 : i32
    %c0_i32_0 = arith.constant 0 : i32
    %c0_i32_1 = arith.constant 0 : i32
    return %c0_i32, %c0_i32_0 : i32, i32
  }
  func.func @transform_6(%arg0: i32) -> (i32, i32) {
    %c0_i32 = arith.constant 0 : i32
    %c0_i32_0 = arith.constant 0 : i32
    %c0_i32_1 = arith.constant 0 : i32
    return %c0_i32, %c0_i32_0 : i32, i32
  }
  func.func @transform_7(%arg0: i32) -> (i32, i32) {
    %c0_i32 = arith.constant 0 : i32
    %c0_i32_0 = arith.constant 0 : i32
    %c0_i32_1 = arith.constant 0 : i32
    return %c0_i32, %c0_i32_0 : i32, i32
  }
  func.func @transform_8(%arg0: i32) -> (i32, i32) {
    %c0_i32 = arith.constant 0 : i32
    %c0_i32_0 = arith.constant 0 : i32
    %c0_i32_1 = arith.constant 0 : i32
    return %c0_i32, %c0_i32_0 : i32, i32
  }
  func.func @transform_9(%arg0: i32) -> (i32, i32, i32) {
    %c0_i32 = arith.constant 0 : i32
    %c0_i32_0 = arith.constant 0 : i32
    %c0_i32_1 = arith.constant 0 : i32
    return %arg0, %c0_i32, %c0_i32_0 : i32, i32, i32
  }
}

</mosaic_0001>

<bundles_post_ra>
// kernel: _forward_nchw.1
= control target key start
LH: loop header
LB: loop body
LE: loop exit
PB: predicated region body
PF: predicated region fallthrough
CT: control target
= control target key end

     0   :  { %s2420_s30 = smov 0   ;;  %s2990_s0 = inlined_call_operand.vmem [shape: bf16[4,18,64], index: 0, kind: input, shape index: {}]   ;;  %s2991_s1 = inlined_call_operand.vmem [shape: bf16[192,128], index: 1, kind: input, shape index: {}]   ;;  %s2992_s2 = inlined_call_operand.vmem [shape: bf16[28,16], index: 2, kind: input, shape index: {}]   ;;  %s2993_s3 = inlined_call_operand.vmem [shape: bf16[128,256], index: 3, kind: input, shape index: {}]   ;;  %s2994_s4 = inlined_call_operand.vmem [shape: bf16[4,10,56], index: 4, kind: input, shape index: {}]   ;;  %s2995_s5 = inlined_call_operand.vmem [shape: bf16[168,128], index: 5, kind: input, shape index: {}]   ;;  %s2996_s6 = inlined_call_operand.vmem [shape: bf16[28,8], index: 6, kind: input, shape index: {}]   ;;  %s2997_s7 = inlined_call_operand.vmem [shape: bf16[128,256], index: 7, kind: input, shape index: {}]   ;;  %s2998_s8 = inlined_call_operand.vmem [shape: f32[1,256], index: 8, kind: input, shape index: {}]   ;;  %s2999_s9 = inlined_call_operand.vmem [shape: f32[4,28,256], index: 9, kind: output, shape index: {}]  }
   0x1 LB: > { %s2033_s10 = sadd.s32 4294967295, %s2364_s30   ;;  %p2037_p0 = scmp.ge.s32.totalorder %s2364_s30, 1  ;;  %s2364_s30 = sphi %s2420_s30, %s19_s30  }
   0x2   : > { %p301_p1 = scmp.lt.s32.totalorder %s2364_s30, 3 }
   0x4   : > { %p302_p2 = pnand %p2037_p0, %p301_p1 }
   0x5   : > { %s2038_s11 = sshll.u32 (!%p302_p2), %s2033_s10, 1  ;;  %s2367_s13 = smov (!%p302_p2), 64  }
   0x6   : > { %305 = sbr.rel (%p302_p2) target bundleno = 1693 (0x69d), region = 56  ;;  %p346_p3 = scmp.lt.s32.totalorder (!%p302_p2), %s2038_s11, 3 }
   0x7   : > { %s2369_s19 = smov (!%p302_p2), 56  }
   0xb   : > { %v2252_v0 = vld [vmem:[%s2991_s1 + $0x38] sm:$0xff]   ;;  %v2366_v1 = vmov 0   ;;  %v2253_v2 = vld [vmem:[%s2991_s1 + $0x30] sm:$0xff]   ;;  %s3001_s11 = smov (!%p346_p3, %s2038_s11), 3  ;;  %v2254_v3 = vld [vmem:[%s2991_s1 + $0x28] sm:$0xff]   ;;  %vm394_vm1 = vcmask 1046528  }
   0xc   : > { %501 = vmatprep.subr.bf16.mxu0 %v2366_v1  ;;  %s2237_s16 = smul.u32 12, %s3001_s11  ;;  %vm379_vm0 = vsmask.f32 7424  ;;  %v2255_v6 = vld [vmem:[%s2991_s1 + $0x20] sm:$0xff]   ;;  %s2197_s24 = sshll.u32 %s3001_s11, 3  ;;  %v2256_v13 = vld [vmem:[%s2991_s1 + $0x18] sm:$0xff]  }
   0xd   : > { %502 = vmatpush1.bf16.msra.mxu0 %v2252_v0  ;;  %s2458_s27 = scalar_lea.vmem %s2994_s4, %s2197_s24  ;;  %vm398_vm2 = vcmask 523264   ;;  %v2257_v18 = vld [vmem:[%s2991_s1 + $0x10] sm:$0xff]   ;;  %v2258_v25 = vld [vmem:[%s2991_s1 + $0x8] sm:$0xff]   ;;  %v2259_v28 = vld [vmem:[%s2991_s1] sm:$0xff]   ;;  %vm557_vm3 = vcmask 130048   ;;  %vm742_vm4 = vcmask 326656  }
   0xe   : > { %503 = vmatprep.subr.bf16.mxu0 %v2366_v1  ;;  %s2445_s21 = scalar_lea.vmem %s2990_s0, %s2237_s16  ;;  %v2465_v16 = vld [vmem:[%s2458_s27] sm:$0xf]  ;;  %v632_v17 = vld [vmem:[%s2458_s27 + $0x4] sm:$0x1]  ;;  %s2368_s16 = smov 112   ;;  %v2260_v29 = vld [vmem:[%s2991_s1 + $0x58] sm:$0xff]  }
   0xf   : > { %v2250_v4 = vld [vmem:[%s2445_s21] sm:$0xff]   ;;  %v2251_v5 = vld [vmem:[%s2445_s21 + $0x8] ss:$0 sps:$4 sm:$0x11]   ;;  %v2065_v20 = vcombine.low %v2465_v16, %v632_v17  ;;  %v2261_v30 = vld [vmem:[%s2991_s1 + $0x50] sm:$0xff]   ;;  %vm745_vm5 = vcmask 1043456  }
  0x10   : > { %v381_v7 = vshrl.u32 %v2250_v4, 16  ;;  %v383_v8 = vshll.u32 %v2250_v4, 16  ;;  %v388_v9 = vshll.u32 %v2251_v5, 16  ;;  %v395_v10 = vrot.slane %v2250_v4, 1  ;;  %v2262_v31 = vld [vmem:[%s2991_s1 + $0x48] sm:$0xff]   ;;  %v2263_v32 = vld [vmem:[%s2991_s1 + $0x40] sm:$0xff]  }
  0x11   : > { %504 = vmatpush1.bf16.msra.mxu0 %v2253_v2  ;;  %v396_v14 = vrot.slane %v2251_v5, 1  ;;  %v639_v22 = vshrl.u32 %v2065_v20, 16  ;;  %v641_v23 = vshll.u32 %v2065_v20, 16  ;;  %v647_v24 = vrot.slane %v2065_v20, 1  ;;  %v2265_v35 = vld [vmem:[%s2992_s2] sm:$0xff]   ;;  %v2267_v54 = vld [vmem:[%s2995_s5 + $0x38] sm:$0xff]  }
  0x12   : > { %505 = vmatprep.subr.bf16.mxu0 %v2366_v1  ;;  %v385_v11 = vrot.slane %v383_v8, 1  ;;  %v390_v12 = vrot.slane %v388_v9, 1  ;;  %2213 = vmatprep.mubr.msk.bf16.mxu1 %vm557_vm3, %v2265_v35  ;;  %v2512_v36 = vld [vmem:[%s2993_s3 + $0x70] ss:$8 sps:$4 sm:$0xff]   ;;  %v2517_v37 = vld [vmem:[%s2993_s3 + $0x74] ss:$8 sps:$4 sm:$0xff]  }
  0x13   : > { %v397_v19 = vsel %vm394_vm1, %v395_v10, %v396_v14  ;;  %v643_v26 = vrot.slane %v641_v23, 1  ;;  %648 = vrot.lane.b32.xlu1 %v647_v24, %s2368_s16  ;;  %v2522_v38 = vld [vmem:[%s2993_s3 + $0x64] ss:$8 sps:$4 sm:$0xff]   ;;  %v2529_v39 = vld [vmem:[%s2993_s3 + $0x60] ss:$8 sps:$4 sm:$0xff]   ;;  %v2268_v56 = vld [vmem:[%s2995_s5 + $0x30] sm:$0xff]  }
  0x14   : > { %v386_v15 = vor.u32 %v385_v11, %v381_v7  ;;  %2060 = vmatprep.mubr.msk.bf16.mxu0 %vm398_vm2, %v397_v19  ;;  %v2535_v40 = vld [vmem:[%s2993_s3 + $0x54] ss:$8 sps:$4 sm:$0xff]   ;;  %v2541_v41 = vld [vmem:[%s2993_s3 + $0x50] ss:$8 sps:$4 sm:$0xff]   ;;  %v2547_v42 = vld [vmem:[%s2993_s3 + $0x44] ss:$8 sps:$4 sm:$0xff]  }
  0x15   : > { %506 = vmatpush1.bf16.msra.mxu0 %v2254_v3  ;;  %v644_v27 = vor.u32 %v643_v26, %v639_v22  ;;  %v2553_v43 = vld [vmem:[%s2993_s3 + $0x40] ss:$8 sps:$4 sm:$0xff]   ;;  %v2559_v44 = vld [vmem:[%s2993_s3 + $0x34] ss:$8 sps:$4 sm:$0xff]   ;;  %v2565_v45 = vld [vmem:[%s2993_s3 + $0x30] ss:$8 sps:$4 sm:$0xff]  }
  0x16   : > { %507 = vmatprep.subr.bf16.mxu0 %v2366_v1  ;;  %v391_v21 = vsel %vm379_vm0, %v386_v15, %v390_v12  ;;  %v2571_v46 = vld [vmem:[%s2993_s3 + $0x24] ss:$8 sps:$4 sm:$0xff]   ;;  %v2577_v47 = vld [vmem:[%s2993_s3 + $0x20] ss:$8 sps:$4 sm:$0xff]   ;;  %v2271_v59 = vld [vmem:[%s2995_s5 + $0x18] sm:$0xff]   ;;  %vm650_vm6 = vcmask 457728  }
  0x17   : > { %392 = vrot.lane.b32.xlu0 %v391_v21, %s2367_s13  ;;  %v2266_v53 = vld [vmem:[%s2992_s2 + $0x8] sm:$0x3f]   ;;  %v2270_v58 = vld [vmem:[%s2995_s5 + $0x20] sm:$0xff]   ;;  %v2272_v60 = vld [vmem:[%s2995_s5 + $0x10] sm:$0xff]   ;;  %vm654_vm7 = vcmask 916480   ;;  %vm804_vm8 = vcmask 64512  }
  0x18   : > { %v2269_v57 = vld [vmem:[%s2995_s5 + $0x28] sm:$0xff]   ;;  %v2274_v62 = vld [vmem:[%s2995_s5] sm:$0xff]   ;;  %v2275_v63 = vld [vmem:[%s2995_s5 + $0x50] ss:$0 sps:$4 sm:$0xff]   ;;  %s2198_s25 = sshll.u32 %s3001_s11, 6 }
  0x19   : > { %508 = vmatpush1.bf16.msra.mxu0 %v2255_v6  ;;  %v2273_v61 = vld [vmem:[%s2995_s5 + $0x8] sm:$0xff]   ;;  %v747_v0 = vsel %vm745_vm5, %v2275_v63, 0  ;;  %v2637_v7 = vld [vmem:[%s2993_s3 + $0x14] ss:$8 sps:$4 sm:$0xff]   ;;  %v2642_v8 = vld [vmem:[%s2993_s3 + $0x10] ss:$8 sps:$4 sm:$0xff]   ;;  %s2854_s29 = scalar_lea.vmem %s2999_s9, %s2198_s25 }
  0x1a   : > { %509 = vmatprep.subr.bf16.mxu0 %v2366_v1  ;;  %v2276_v2 = vld [vmem:[%s2995_s5 + $0x48] sm:$0xff]   ;;  %v2302_v11 = vld [vmem:[%s2996_s6] sm:$0xff]   ;;  %v2689_v35 = vld [vmem:[%s2997_s7 + $0x74] ss:$8 sps:$4 sm:$0xff]  }
  0x1b   : > { %645 = vrot.lane.b32.xlu0 %v644_v27, %s2369_s19  ;;  %v2649_v9 = vld [vmem:[%s2993_s3 + $0x4] ss:$8 sps:$4 sm:$0xff]   ;;  %v2654_v10 = vld [vmem:[%s2993_s3] ss:$8 sps:$4 sm:$0xff]  }
  0x1c   : > { %v2663_v12 = vld [vmem:[%s2445_s21 + $0xc] sm:$0xff]  }
  0x1d   : > { %510 = vmatpush1.bf16.msra.mxu0 %v2256_v13  ;;  %v2666_v13 = vld [vmem:[%s2445_s21 + $0x14] ss:$0 sps:$4 sm:$0x11]   ;;  %v1187_v14 = vshrl.u32 %v2663_v12, 16  ;;  %v1189_v15 = vshll.u32 %v2663_v12, 16 }
  0x1e   : > { %511 = vmatprep.subr.bf16.mxu0 %v2366_v1  ;;  %v2137_v63 = vld [vmem:[%s2458_s27 + $0xc] sm:$0x1] }
  0x1f   : > { %v1191_v17 = vrot.slane %v1189_v15, 1 }
  0x21   : > { %512 = vmatpush1.bf16.msra.mxu0 %v2257_v18  ;;  %v1192_v19 = vor.u32 %v1191_v17, %v1187_v14  ;;  %v2330_v17 = vld [vmem:[%s2991_s1 + $0x38] sm:$0xff]  }
  0x22   : > { %513 = vmatprep.subr.bf16.mxu0 %v2366_v1 }
  0x25   : > { %514 = vmatpush1.bf16.msra.mxu0 %v2258_v25 }
  0x26   : > { %515 = vmatprep.subr.bf16.mxu0 %v2366_v1 }
  0x29   : > { %516 = vmatpush1.bf16.msra.mxu0 %v2259_v28 }
  0x2a   : > { %525 = vmatprep.subr.bf16.mxu0 %v2366_v1 }
  0x2d   : > { %526 = vmatpush2.bf16.msra.mxu0 %v2260_v29 }
  0x2e   : > { %527 = vmatprep.subr.bf16.mxu0 %v2366_v1 }
  0x31   : > { %528 = vmatpush2.bf16.msra.mxu0 %v2261_v30 }
  0x32   : > { %529 = vmatprep.subr.bf16.mxu0 %v2366_v1 }
  0x35   : > { %530 = vmatpush2.bf16.msra.mxu0 %v2262_v31  ;;  %v2303_v31 = vld [vmem:[%s2996_s6 + $0x8] sm:$0x3f]  }
  0x36   : > { %531 = vmatprep.subr.bf16.mxu0 %v2366_v1 }
  0x39   : > { %532 = vmatpush2.bf16.msra.mxu0 %v2263_v32 }
  0x3a   : > { %1094 = vmatprep.subr.bf16.mxu0 %v2517_v37 }
  0x85   : > { %v649_v55 = vpop.permute.xlu1 %648 }
  0x89   : > { %v393_v33 = vpop.permute.xlu0 %392 }
  0x8a   : > { %v400_v34 = vsel %vm398_vm2, %v2250_v4, %v393_v33  ;;  %v2277_v4 = vld [vmem:[%s2995_s5 + $0x40] sm:$0xff]  }
  0x8b   : > { %534 = vmatmul.mubr.bf16.vlgmr.msra.gmra.mxu0 %v400_v34  ;;  %v2684_v34 = vld [vmem:[%s2997_s7 + $0x70] ss:$8 sps:$4 sm:$0xff]  }
  0x8c   : > { %1126 = vmatprep.mubr.bf16.mxu0 %v2366_v1  ;;  %1095 = vmatpush1.bf16.msra.mxu0 %v2512_v36 }
  0x8d   : > { %1096 = vmatprep.subr.bf16.mxu0 %v2522_v38  ;;  %v646_v3 = vpop.permute.xlu0 %645 }
  0x8e   : > { %v653_v5 = vsel %vm650_vm6, %v2465_v16, %v646_v3  ;;  %v1194_v16 = vshll.u32 %v2666_v13, 16 }
  0x8f   : > { %v656_v6 = vsel %vm654_vm7, %v653_v5, %v649_v55 }
  0x90   : > { %1097 = vmatpush1.bf16.msra.mxu0 %v2529_v39  ;;  %v1196_v18 = vrot.slane %v1194_v16, 1 }
  0x91   : > { %1098 = vmatprep.subr.bf16.mxu0 %v2535_v40 }
  0x92   : > { %v1197_v20 = vsel %vm379_vm0, %v1192_v19, %v1196_v18  ;;  %v2331_v19 = vld [vmem:[%s2991_s1 + $0x30] sm:$0xff]  }
  0x93   : > { %1198 = vrot.lane.b32.xlu1 %v1197_v20, %s2367_s13  ;;  %v1200_v20 = vrot.slane %v2663_v12, 1 }
  0x94   : > { %1099 = vmatpush1.bf16.msra.mxu0 %v2541_v41 }
  0x95   : > { %1100 = vmatprep.subr.bf16.mxu0 %v2547_v42 }
  0x98   : > { %1101 = vmatpush1.bf16.msra.mxu0 %v2553_v43 }
  0x99   : > { %1102 = vmatprep.subr.bf16.mxu0 %v2559_v44 }
  0x9c   : > { %1103 = vmatpush1.bf16.msra.mxu0 %v2565_v45 }
  0x9d   : > { %1104 = vmatprep.subr.bf16.mxu0 %v2571_v46 }
  0xa0   : > { %1105 = vmatpush1.bf16.msra.mxu0 %v2577_v47 }
  0xa1   : > { %1106 = vmatprep.subr.bf16.mxu0 %v2637_v7 }
  0xa4   : > { %1107 = vmatpush1.bf16.msra.mxu0 %v2642_v8 }
  0xa5   : > { %1108 = vmatprep.subr.bf16.mxu0 %v2649_v9 }
  0xa8   : > { %1109 = vmatpush1.bf16.msra.mxu0 %v2654_v10 }
 0x14b   : > { %v535_v48 = vpop.f32.mrf.mxu0 }
 0x14d   : > { %v537_v49 = vpop.f32.mrf.mxu0 }
 0x14e   : > { %v2701_v49 = vld [vmem:[%s2997_s7 + $0x60] ss:$8 sps:$4 sm:$0xff]  }
 0x14f   : > { %v538_v50 = vpop.f32.mrf.mxu0 }
 0x150   : > { %v546_v51 = vpack.c.bf16 %v538_v50, %v535_v48  ;;  %v2694_v48 = vld [vmem:[%s2997_s7 + $0x64] ss:$8 sps:$4 sm:$0xff]   ;;  %v2707_v50 = vld [vmem:[%s2997_s7 + $0x54] ss:$8 sps:$4 sm:$0xff]  }
 0x151   : > { %v540_v52 = vpop.f32.mrf.mxu0 }
 0x152   : > { %2211 = vmatprep.subr.bf16.mxu1 %v546_v51  ;;  %v2719_v52 = vld [vmem:[%s2997_s7 + $0x44] ss:$8 sps:$4 sm:$0xff]  }
 0x153   : > { %2212 = vmatpush3.bf16.msra.mxu1 %v546_v51  ;;  %v2713_v51 = vld [vmem:[%s2997_s7 + $0x50] ss:$8 sps:$4 sm:$0xff]  }
 0x154   : > { %749 = vmatprep.subr.bf16.mxu1 %v2366_v1 }
 0x156   : > { %2214 = vmatmul.mubr.msk.bf16.vlgmr.msra.gmra.mxu1 %vm557_vm3, %v2266_v53  ;;  %v2725_v53 = vld [vmem:[%s2997_s7 + $0x40] ss:$8 sps:$4 sm:$0xff]  }
 0x157   : > { %750 = vmatpush1.bf16.msra.mxu1 %v2267_v54  ;;  %2077 = vmatprep.mubr.msk.bf16.mxu1 %vm742_vm4, %v649_v55  ;;  %v2731_v54 = vld [vmem:[%s2997_s7 + $0x34] ss:$8 sps:$4 sm:$0xff]   ;;  %v2737_v55 = vld [vmem:[%s2997_s7 + $0x30] ss:$8 sps:$4 sm:$0xff]  }
 0x158   : > { %751 = vmatprep.subr.bf16.mxu1 %v2366_v1 }
 0x15b   : > { %752 = vmatpush1.bf16.msra.mxu1 %v2268_v56  ;;  %v2743_v56 = vld [vmem:[%s2997_s7 + $0x24] ss:$8 sps:$4 sm:$0xff]  }
 0x15c   : > { %753 = vmatprep.subr.bf16.mxu1 %v2366_v1 }
 0x15f   : > { %754 = vmatpush1.bf16.msra.mxu1 %v2269_v57  ;;  %v2749_v57 = vld [vmem:[%s2997_s7 + $0x20] ss:$8 sps:$4 sm:$0xff]  }
 0x160   : > { %755 = vmatprep.subr.bf16.mxu1 %v2366_v1 }
 0x163   : > { %756 = vmatpush1.bf16.msra.mxu1 %v2270_v58  ;;  %v2756_v58 = vld [vmem:[%s2997_s7 + $0x14] ss:$8 sps:$4 sm:$0xff]  }
 0x164   : > { %757 = vmatprep.subr.bf16.mxu1 %v2366_v1 }
 0x167   : > { %758 = vmatpush1.bf16.msra.mxu1 %v2271_v59  ;;  %v2761_v59 = vld [vmem:[%s2997_s7 + $0x10] ss:$8 sps:$4 sm:$0xff]  }
 0x168   : > { %759 = vmatprep.subr.bf16.mxu1 %v2366_v1 }
 0x16b   : > { %760 = vmatpush1.bf16.msra.mxu1 %v2272_v60  ;;  %v2768_v60 = vld [vmem:[%s2997_s7 + $0x4] ss:$8 sps:$4 sm:$0xff]  }
 0x16c   : > { %761 = vmatprep.subr.bf16.mxu1 %v2366_v1 }
 0x16f   : > { %762 = vmatpush1.bf16.msra.mxu1 %v2273_v61  ;;  %v2773_v61 = vld [vmem:[%s2997_s7] ss:$8 sps:$4 sm:$0xff]  }
 0x170   : > { %763 = vmatprep.subr.bf16.mxu1 %v2366_v1 }
 0x173   : > { %764 = vmatpush1.bf16.msra.mxu1 %v2274_v62  ;;  %v2779_v62 = vld [vmem:[%s2458_s27 + $0x8] sm:$0xf] }
 0x174   : > { %775 = vmatprep.subr.bf16.mxu1 %v2366_v1 }
 0x177   : > { %776 = vmatpush2.bf16.msra.mxu1 %v747_v0  ;;  %v2138_v0 = vcombine.low %v2779_v62, %v2137_v63 }
 0x178   : > { %777 = vmatprep.subr.bf16.mxu1 %v2366_v1 }
 0x179   : > { %v1445_v3 = vshll.u32 %v2138_v0, 16 }
 0x17b   : > { %778 = vmatpush2.bf16.msra.mxu1 %v2276_v2  ;;  %v1443_v2 = vshrl.u32 %v2138_v0, 16  ;;  %v1447_v5 = vrot.slane %v1445_v3, 1  ;;  %v1148_v3 = vlaneseq }
 0x17c   : > { %779 = vmatprep.subr.bf16.mxu1 %v2366_v1 }
 0x17f   : > { %780 = vmatpush2.bf16.msra.mxu1 %v2277_v4  ;;  %v1451_v4 = vrot.slane %v2138_v0, 1  ;;  %v2343_v0 = vld [vmem:[%s2992_s2] sm:$0xff]  }
 0x181   : > { %1452 = vrot.lane.b32.xlu1 %v1451_v4, %s2368_s16 }
 0x182   : > { %782 = vmatmul.mubr.bf16.vlgmr.msra.gmra.mxu1 %v656_v6  ;;  %v1448_v6 = vor.u32 %v1447_v5, %v1443_v2  ;;  %v1149_v5 = vshrl.u32 %v1148_v3, 7 }
 0x183   : > { %2219 = vmatprep.mubr.msk.bf16.mxu1 %vm804_vm8, %v2302_v11 }
 0x184   : > { %1449 = vrot.lane.b32.xlu0 %v1448_v6, %s2369_s19 }
 0x216   : > { %v2215_v21 = vpop.f32.mrf.mxu1 }
 0x218   : > { %v598_v22 = vpop.f32.mrf.mxu1 }
 0x21a   : > { %v2216_v23 = vpop.f32.mrf.mxu1 }
 0x21b   : > { %v614_v26 = vpack.c.bf16 %v2216_v23, %v2215_v21  ;;  %v1201_v21 = vrot.slane %v2666_v13, 1  ;;  %v2334_v13 = vld [vmem:[%s2991_s1 + $0x18] sm:$0xff]  }
 0x21c   : > { %v601_v24 = vpop.f32.mrf.mxu1 }
 0x21d   : > { %v613_v25 = vpack.c.bf16 %v601_v24, %v598_v22  ;;  %v2332_v22 = vld [vmem:[%s2991_s1 + $0x28] sm:$0xff]   ;;  %v1202_v24 = vsel %vm394_vm1, %v1200_v20, %v1201_v21 }
 0x21f   : > { %1127 = vmatmul.mubr.bf16.vlgmr.msra.gmra.mxu0 %v613_v25  ;;  %v2333_v25 = vld [vmem:[%s2991_s1 + $0x20] sm:$0xff]  }
 0x220   : > { %1136 = vmatprep.mubr.bf16.mxu0 %v2366_v1 }
 0x227   : > { %1137 = vmatmul.mubr.bf16.gmra.mxu0 %v614_v26  ;;  %v2335_v26 = vld [vmem:[%s2991_s1 + $0x10] sm:$0xff]  }
 0x228   : > { %2225 = vmatprep.mubr.msk.bf16.mxu0 %vm557_vm3, %v2343_v0 }
 0x242   : > { %v783_v27 = vpop.f32.mrf.mxu1 }
 0x243   : > { %v793_v28 = vpack.c.bf16 %v783_v27, %v783_v27  ;;  %v2336_v27 = vld [vmem:[%s2991_s1 + $0x8] sm:$0xff]  }
 0x244   : > { %v785_v29 = vpop.f32.mrf.mxu1 }
 0x245   : > { %v812_v30 = vsel %vm745_vm5, %v793_v28, 0  ;;  %2235 = vmatprep.subr.msk.bf16.mxu1 %vm745_vm5, %v793_v28  ;;  %v2337_v28 = vld [vmem:[%s2991_s1] sm:$0xff]   ;;  %v2338_v29 = vld [vmem:[%s2991_s1 + $0x58] sm:$0xff]  }
 0x246   : > { %v786_v32 = vpop.f32.mrf.mxu1  ;;  %2218 = vmatpush3.bf16.msra.mxu1 %v812_v30  ;;  %v2339_v30 = vld [vmem:[%s2991_s1 + $0x50] sm:$0xff]  }
 0x247   : > { %961 = vmatprep.subr.bf16.mxu1 %v2689_v35  ;;  %v2341_v32 = vld [vmem:[%s2991_s1 + $0x40] sm:$0xff]  }
 0x248   : > { %v787_v33 = vpop.f32.mrf.mxu1 }
 0x249   : > { %2220 = vmatmul.mubr.msk.bf16.vlgmr.msra.gmra.mxu1 %vm804_vm8, %v2303_v31  ;;  %v2340_v31 = vld [vmem:[%s2991_s1 + $0x48] sm:$0xff]   ;;  %v1199_v33 = vpop.permute.xlu1 %1198 }
 0x24a   : > { %993 = vmatprep.mubr.bf16.mxu1 %v2366_v1  ;;  %962 = vmatpush1.bf16.msra.mxu1 %v2684_v34  ;;  %v1204_v63 = vsel %vm398_vm2, %v2663_v12, %v1199_v33 }
 0x24b   : > { %963 = vmatprep.subr.bf16.mxu1 %v2694_v48 }
 0x24e   : > { %964 = vmatpush1.bf16.msra.mxu1 %v2701_v49 }
 0x24f   : > { %965 = vmatprep.subr.bf16.mxu1 %v2707_v50 }
 0x252   : > { %966 = vmatpush1.bf16.msra.mxu1 %v2713_v51 }
 0x253   : > { %967 = vmatprep.subr.bf16.mxu1 %v2719_v52 }
 0x256   : > { %968 = vmatpush1.bf16.msra.mxu1 %v2725_v53 }
 0x257   : > { %969 = vmatprep.subr.bf16.mxu1 %v2731_v54 }
 0x25a   : > { %970 = vmatpush1.bf16.msra.mxu1 %v2737_v55 }
 0x25b   : > { %971 = vmatprep.subr.bf16.mxu1 %v2743_v56 }
 0x25e   : > { %972 = vmatpush1.bf16.msra.mxu1 %v2749_v57 }
 0x25f   : > { %973 = vmatprep.subr.bf16.mxu1 %v2756_v58 }
 0x262   : > { %974 = vmatpush1.bf16.msra.mxu1 %v2761_v59 }
 0x263   : > { %975 = vmatprep.subr.bf16.mxu1 %v2768_v60 }
 0x266   : > { %976 = vmatpush1.bf16.msra.mxu1 %v2773_v61 }
 0x267   : > { %1305 = vmatprep.subr.bf16.mxu1 %v2366_v1 }
 0x2df   : > { %v1128_v2 = vpop.f32.mrf.mxu0 }
 0x2e1   : > { %v1130_v4 = vpop.f32.mrf.mxu0 }
 0x2e3   : > { %v1132_v6 = vpop.f32.mrf.mxu0 }
 0x309   : > { %v2221_v11 = vpop.f32.mrf.mxu1 }
 0x30b   : > { %v848_v14 = vpop.f32.mrf.mxu1 }
 0x30d   : > { %v2222_v15 = vpop.f32.mrf.mxu1 }
 0x30e   : > { %v864_v23 = vpack.c.bf16 %v2222_v15, %v2221_v11  ;;  %v1150_v11 = vsub.s32 0, %v1149_v5  ;;  %v1154_v15 = vsub.s32 1, %v1149_v5 }
 0x30f   : > { %v851_v16 = vpop.f32.mrf.mxu1 }
 0x310   : > { %v863_v18 = vpack.c.bf16 %v851_v16, %v848_v14  ;;  %v367_v14 = vld [vmem:[%s2998_s8] sm:$0x3]  ;;  %v1134_v16 = vpop.f32.mrf.mxu0 }
 0x311   : > { %v2847_v12 = vrot.slane %v367_v14, %v1150_v11 }
 0x312   : > { %994 = vmatmul.mubr.bf16.vlgmr.msra.gmra.mxu1 %v863_v18  ;;  %v1138_v20 = vpop.f32.mrf.mxu0 }
 0x313   : > { %1306 = vmatpush1.bf16.msra.mxu1 %v2330_v17  ;;  %1003 = vmatprep.mubr.bf16.mxu1 %v2366_v1 }
 0x314   : > { %1307 = vmatprep.subr.bf16.mxu1 %v2366_v1 }
 0x317   : > { %1308 = vmatpush1.bf16.msra.mxu1 %v2331_v19  ;;  %v2849_v19 = vrot.slane %v367_v14, %v1154_v15 }
 0x318   : > { %1309 = vmatprep.subr.bf16.mxu1 %v2366_v1 }
 0x31a   : > { %1004 = vmatmul.mubr.bf16.gmra.mxu1 %v864_v23 }
 0x31b   : > { %1310 = vmatpush1.bf16.msra.mxu1 %v2332_v22  ;;  %2131 = vmatprep.mubr.msk.bf16.mxu1 %vm398_vm2, %v1202_v24 }
 0x31c   : > { %1311 = vmatprep.subr.bf16.mxu1 %v2366_v1 }
 0x31f   : > { %1312 = vmatpush1.bf16.msra.mxu1 %v2333_v25 }
 0x320   : > { %1313 = vmatprep.subr.bf16.mxu1 %v2366_v1 }
 0x323   : > { %1314 = vmatpush1.bf16.msra.mxu1 %v2334_v13 }
 0x324   : > { %1315 = vmatprep.subr.bf16.mxu1 %v2366_v1 }
 0x327   : > { %1316 = vmatpush1.bf16.msra.mxu1 %v2335_v26  ;;  %v1140_v26 = vpop.f32.mrf.mxu0 }
 0x328   : > { %1317 = vmatprep.subr.bf16.mxu1 %v2366_v1 }
 0x329   : > { %v1142_v33 = vpop.f32.mrf.mxu0 }
 0x32b   : > { %1318 = vmatpush1.bf16.msra.mxu1 %v2336_v27 }
 0x32c   : > { %1319 = vmatprep.subr.bf16.mxu1 %v2366_v1 }
 0x32f   : > { %1320 = vmatpush1.bf16.msra.mxu1 %v2337_v28 }
 0x330   : > { %1329 = vmatprep.subr.bf16.mxu1 %v2366_v1 }
 0x333   : > { %1330 = vmatpush2.bf16.msra.mxu1 %v2338_v29 }
 0x334   : > { %1331 = vmatprep.subr.bf16.mxu1 %v2366_v1 }
 0x337   : > { %1332 = vmatpush2.bf16.msra.mxu1 %v2339_v30 }
 0x338   : > { %1333 = vmatprep.subr.bf16.mxu1 %v2366_v1 }
 0x33b   : > { %1334 = vmatpush2.bf16.msra.mxu1 %v2340_v31 }
 0x33c   : > { %1335 = vmatprep.subr.bf16.mxu1 %v2366_v1 }
 0x33f   : > { %1336 = vmatpush2.bf16.msra.mxu1 %v2341_v32 }
 0x342   : > { %1338 = vmatmul.mubr.bf16.vlgmr.msra.gmra.mxu1 %v1204_v63 }
 0x3d2   : > { %v995_v17 = vpop.f32.mrf.mxu1 }
 0x3d3   : > { %v1129_v18 = vadd.f32 %v1128_v2, %v995_v17 }
 0x3d4   : > { %v997_v21 = vpop.f32.mrf.mxu1 }
 0x3d5   : > { %v1158_v22 = vadd.f32 %v2847_v12, %v1129_v18  ;;  %v1131_v23 = vadd.f32 %v1130_v4, %v997_v21 }
 0x3d6   : > { %v999_v24 = vpop.f32.mrf.mxu1 }
 0x3d7   : > { %1166 = vst [vmem:[%s2854_s29] sm:$0xff] %v1158_v22  ;;  %v1159_v25 = vadd.f32 %v2849_v19, %v1131_v23  ;;  %v1133_v13 = vadd.f32 %v1132_v6, %v999_v24  ;;  %v1144_v6 = vpop.f32.mrf.mxu0  ;;  %v2344_v23 = vld [vmem:[%s2992_s2 + $0x8] sm:$0x3f]   ;;  %v2345_v24 = vld [vmem:[%s2995_s5 + $0x38] sm:$0xff]  }
 0x3d8   : > { %v1001_v27 = vpop.f32.mrf.mxu1 }
 0x3d9   : > { %1167 = vst [vmem:[%s2854_s29 + $0x8] sm:$0xff] %v1159_v25  ;;  %v1160_v28 = vadd.f32 %v2847_v12, %v1133_v13  ;;  %v1135_v29 = vadd.f32 %v1134_v16, %v1001_v27  ;;  %v1453_v25 = vpop.permute.xlu1 %1452  ;;  %v2346_v13 = vld [vmem:[%s2995_s5 + $0x30] sm:$0xff]   ;;  %v2348_v27 = vld [vmem:[%s2995_s5 + $0x20] sm:$0xff]  }
 0x3da   : > { %v1005_v30 = vpop.f32.mrf.mxu1 }
 0x3db   : > { %1168 = vst [vmem:[%s2854_s29 + $0x10] sm:$0xff] %v1160_v28  ;;  %v1161_v31 = vadd.f32 %v2849_v19, %v1135_v29  ;;  %v1139_v32 = vadd.f32 %v1138_v20, %v1005_v30  ;;  %v2349_v28 = vld [vmem:[%s2995_s5 + $0x18] sm:$0xff]   ;;  %v2350_v29 = vld [vmem:[%s2995_s5 + $0x10] sm:$0xff]   ;;  %v2351_v30 = vld [vmem:[%s2995_s5 + $0x8] sm:$0xff]  }
 0x3dc   : > { %v1007_v63 = vpop.f32.mrf.mxu1 }
 0x3dd   : > { %1169 = vst [vmem:[%s2854_s29 + $0x18] sm:$0xff] %v1161_v31  ;;  %v1162_v0 = vadd.f32 %v2847_v12, %v1139_v32  ;;  %v1141_v2 = vadd.f32 %v1140_v26, %v1007_v63  ;;  %v2347_v26 = vld [vmem:[%s2995_s5 + $0x28] sm:$0xff]   ;;  %v2352_v31 = vld [vmem:[%s2995_s5] sm:$0xff]   ;;  %v2353_v32 = vld [vmem:[%s2995_s5 + $0x50] ss:$0 sps:$4 sm:$0xff]  }
 0x3de   : > { %v1009_v3 = vpop.f32.mrf.mxu1  ;;  %v2354_v63 = vld [vmem:[%s2995_s5 + $0x48] sm:$0xff]  }
 0x3df   : > { %1170 = vst [vmem:[%s2854_s29 + $0x20] sm:$0xff] %v1162_v0  ;;  %v1163_v4 = vadd.f32 %v2849_v19, %v1141_v2  ;;  %v1143_v5 = vadd.f32 %v1142_v33, %v1009_v3  ;;  %v1547_v33 = vsel %vm745_vm5, %v2353_v32, 0  ;;  %v1450_v0 = vpop.permute.xlu0 %1449  ;;  %v2355_v2 = vld [vmem:[%s2995_s5 + $0x40] sm:$0xff]  }
 0x3e0   : > { %v1011_v11 = vpop.f32.mrf.mxu1  ;;  %v1456_v3 = vsel %vm650_vm6, %v2779_v62, %v1450_v0 }
 0x3e1   : > { %1171 = vst [vmem:[%s2854_s29 + $0x28] sm:$0xff] %v1163_v4  ;;  %v1164_v14 = vadd.f32 %v2847_v12, %v1143_v5  ;;  %v1145_v15 = vadd.f32 %v1144_v6, %v1011_v11  ;;  %v1458_v4 = vsel %vm654_vm7, %v1456_v3, %v1453_v25 }
 0x3e3   : > { %1172 = vst [vmem:[%s2854_s29 + $0x30] sm:$0xf] %v1164_v14  ;;  %v1165_v16 = vadd.f32 %v2849_v19, %v1145_v15 }
 0x3e5   : > { %1173 = vst [vmem:[%s2854_s29 + $0x38] sm:$0xf] %v1165_v16 }
 0x402   : > { %v1339_v17 = vpop.f32.mrf.mxu1 }
 0x404   : > { %v1341_v18 = vpop.f32.mrf.mxu1 }
 0x406   : > { %v1342_v20 = vpop.f32.mrf.mxu1 }
 0x407   : > { %v1350_v21 = vpack.c.bf16 %v1342_v20, %v1339_v17 }
 0x408   : > { %v1344_v22 = vpop.f32.mrf.mxu1 }
 0x409   : > { %2223 = vmatprep.subr.bf16.mxu0 %v1350_v21 }
 0x40a   : > { %2224 = vmatpush3.bf16.msra.mxu0 %v1350_v21 }
 0x40b   : > { %1549 = vmatprep.subr.bf16.mxu0 %v2366_v1 }
 0x40d   : > { %2226 = vmatmul.mubr.msk.bf16.vlgmr.msra.gmra.mxu0 %vm557_vm3, %v2344_v23 }
 0x40e   : > { %1550 = vmatpush1.bf16.msra.mxu0 %v2345_v24  ;;  %2150 = vmatprep.mubr.msk.bf16.mxu0 %vm742_vm4, %v1453_v25 }
 0x40f   : > { %1551 = vmatprep.subr.bf16.mxu0 %v2366_v1 }
 0x412   : > { %1552 = vmatpush1.bf16.msra.mxu0 %v2346_v13 }
 0x413   : > { %1553 = vmatprep.subr.bf16.mxu0 %v2366_v1 }
 0x416   : > { %1554 = vmatpush1.bf16.msra.mxu0 %v2347_v26 }
 0x417   : > { %1555 = vmatprep.subr.bf16.mxu0 %v2366_v1 }
 0x41a   : > { %1556 = vmatpush1.bf16.msra.mxu0 %v2348_v27 }
 0x41b   : > { %1557 = vmatprep.subr.bf16.mxu0 %v2366_v1 }
 0x41e   : > { %1558 = vmatpush1.bf16.msra.mxu0 %v2349_v28 }
 0x41f   : > { %1559 = vmatprep.subr.bf16.mxu0 %v2366_v1 }
 0x422   : > { %1560 = vmatpush1.bf16.msra.mxu0 %v2350_v29 }
 0x423   : > { %1561 = vmatprep.subr.bf16.mxu0 %v2366_v1 }
 0x426   : > { %1562 = vmatpush1.bf16.msra.mxu0 %v2351_v30 }
 0x427   : > { %1563 = vmatprep.subr.bf16.mxu0 %v2366_v1 }
 0x42a   : > { %1564 = vmatpush1.bf16.msra.mxu0 %v2352_v31 }
 0x42b   : > { %1575 = vmatprep.subr.bf16.mxu0 %v2366_v1 }
 0x42e   : > { %1576 = vmatpush2.bf16.msra.mxu0 %v1547_v33 }
 0x42f   : > { %1577 = vmatprep.subr.bf16.mxu0 %v2366_v1 }
 0x432   : > { %1578 = vmatpush2.bf16.msra.mxu0 %v2354_v63 }
 0x433   : > { %1579 = vmatprep.subr.bf16.mxu0 %v2366_v1 }
 0x436   : > { %1580 = vmatpush2.bf16.msra.mxu0 %v2355_v2 }
 0x437   : > { %1893 = vmatprep.subr.bf16.mxu0 %v2517_v37 }
 0x439   : > { %1582 = vmatmul.mubr.bf16.vlgmr.msra.gmra.mxu0 %v1458_v4 }
 0x43a   : > { %1894 = vmatpush1.bf16.msra.mxu0 %v2512_v36  ;;  %1925 = vmatprep.mubr.bf16.mxu0 %v2366_v1  ;;  %v2356_v36 = vld [vmem:[%s2996_s6] sm:$0xff]  }
 0x43b   : > { %1895 = vmatprep.subr.bf16.mxu0 %v2522_v38  ;;  %2231 = vmatprep.mubr.msk.bf16.mxu1 %vm804_vm8, %v2356_v36 }
 0x43e   : > { %1896 = vmatpush1.bf16.msra.mxu0 %v2529_v39 }
 0x43f   : > { %1897 = vmatprep.subr.bf16.mxu0 %v2535_v40 }
 0x442   : > { %1898 = vmatpush1.bf16.msra.mxu0 %v2541_v41 }
 0x443   : > { %1899 = vmatprep.subr.bf16.mxu0 %v2547_v42 }
 0x446   : > { %1900 = vmatpush1.bf16.msra.mxu0 %v2553_v43 }
 0x447   : > { %1901 = vmatprep.subr.bf16.mxu0 %v2559_v44 }
 0x44a   : > { %1902 = vmatpush1.bf16.msra.mxu0 %v2565_v45 }
 0x44b   : > { %1903 = vmatprep.subr.bf16.mxu0 %v2571_v46 }
 0x44e   : > { %1904 = vmatpush1.bf16.msra.mxu0 %v2577_v47  ;;  %v2357_v47 = vld [vmem:[%s2996_s6 + $0x8] sm:$0x3f]  }
 0x44f   : > { %1905 = vmatprep.subr.bf16.mxu0 %v2637_v7 }
 0x452   : > { %1906 = vmatpush1.bf16.msra.mxu0 %v2642_v8 }
 0x453   : > { %1907 = vmatprep.subr.bf16.mxu0 %v2649_v9 }
 0x456   : > { %1908 = vmatpush1.bf16.msra.mxu0 %v2654_v10 }
 0x4cd   : > { %v2227_v37 = vpop.f32.mrf.mxu0 }
 0x4cf   : > { %v1401_v38 = vpop.f32.mrf.mxu0 }
 0x4d1   : > { %v2228_v39 = vpop.f32.mrf.mxu0 }
 0x4d2   : > { %v1417_v42 = vpack.c.bf16 %v2228_v39, %v2227_v37 }
 0x4d3   : > { %v1404_v40 = vpop.f32.mrf.mxu0 }
 0x4d4   : > { %v1416_v41 = vpack.c.bf16 %v1404_v40, %v1401_v38 }
 0x4d6   : > { %1926 = vmatmul.mubr.bf16.vlgmr.msra.gmra.mxu0 %v1416_v41 }
 0x4d7   : > { %1935 = vmatprep.mubr.bf16.mxu0 %v2366_v1 }
 0x4de   : > { %1936 = vmatmul.mubr.bf16.gmra.mxu0 %v1417_v42 }
 0x4f9   : > { %v1583_v43 = vpop.f32.mrf.mxu0 }
 0x4fa   : > { %v1593_v44 = vpack.c.bf16 %v1583_v43, %v1583_v43 }
 0x4fb   : > { %v1585_v45 = vpop.f32.mrf.mxu0 }
 0x4fc   : > { %v1611_v46 = vsel %vm745_vm5, %v1593_v44, 0  ;;  %2236 = vmatprep.subr.msk.bf16.mxu1 %vm745_vm5, %v1593_v44 }
 0x4fd   : > { %2230 = vmatpush3.bf16.msra.mxu1 %v1611_v46  ;;  %v1586_v7 = vpop.f32.mrf.mxu0 }
 0x4fe   : > { %1760 = vmatprep.subr.bf16.mxu1 %v2689_v35 }
 0x4ff   : > { %v1587_v8 = vpop.f32.mrf.mxu0 }
 0x500   : > { %2232 = vmatmul.mubr.msk.bf16.vlgmr.msra.gmra.mxu1 %vm804_vm8, %v2357_v47 }
 0x501   : > { %1761 = vmatpush1.bf16.msra.mxu1 %v2684_v34  ;;  %1792 = vmatprep.mubr.bf16.mxu1 %v2366_v1 }
 0x502   : > { %1762 = vmatprep.subr.bf16.mxu1 %v2694_v48 }
 0x505   : > { %1763 = vmatpush1.bf16.msra.mxu1 %v2701_v49 }
 0x506   : > { %1764 = vmatprep.subr.bf16.mxu1 %v2707_v50 }
 0x509   : > { %1765 = vmatpush1.bf16.msra.mxu1 %v2713_v51 }
 0x50a   : > { %1766 = vmatprep.subr.bf16.mxu1 %v2719_v52 }
 0x50d   : > { %1767 = vmatpush1.bf16.msra.mxu1 %v2725_v53 }
 0x50e   : > { %1768 = vmatprep.subr.bf16.mxu1 %v2731_v54 }
 0x511   : > { %1769 = vmatpush1.bf16.msra.mxu1 %v2737_v55 }
 0x512   : > { %1770 = vmatprep.subr.bf16.mxu1 %v2743_v56 }
 0x515   : > { %1771 = vmatpush1.bf16.msra.mxu1 %v2749_v57 }
 0x516   : > { %1772 = vmatprep.subr.bf16.mxu1 %v2756_v58 }
 0x519   : > { %1773 = vmatpush1.bf16.msra.mxu1 %v2761_v59 }
 0x51a   : > { %1774 = vmatprep.subr.bf16.mxu1 %v2768_v60 }
 0x51d   : > { %1775 = vmatpush1.bf16.msra.mxu1 %v2773_v61 }
 0x596   : > { %v1927_v50 = vpop.f32.mrf.mxu0 }
 0x598   : > { %v1929_v51 = vpop.f32.mrf.mxu0 }
 0x59a   : > { %v1931_v52 = vpop.f32.mrf.mxu0 }
 0x59c   : > { %v1933_v53 = vpop.f32.mrf.mxu0 }
 0x59e   : > { %v1937_v56 = vpop.f32.mrf.mxu0 }
 0x5a0   : > { %v1939_v62 = vpop.f32.mrf.mxu0 }
 0x5a2   : > { %v1941_v17 = vpop.f32.mrf.mxu0 }
 0x5a4   : > { %v1943_v25 = vpop.f32.mrf.mxu0 }
 0x5c0   : > { %v2233_v9 = vpop.f32.mrf.mxu1 }
 0x5c2   : > { %v1647_v10 = vpop.f32.mrf.mxu1 }
 0x5c4   : > { %v2234_v34 = vpop.f32.mrf.mxu1 }
 0x5c5   : > { %v1663_v49 = vpack.c.bf16 %v2234_v34, %v2233_v9 }
 0x5c6   : > { %v1650_v35 = vpop.f32.mrf.mxu1 }
 0x5c7   : > { %v1662_v48 = vpack.c.bf16 %v1650_v35, %v1647_v10 }
 0x5c9   : > { %1793 = vmatmul.mubr.bf16.vlgmr.msra.gmra.mxu1 %v1662_v48 }
 0x5ca   : > { %1802 = vmatprep.mubr.bf16.mxu1 %v2366_v1 }
 0x5d1   : > { %1803 = vmatmul.mubr.bf16.gmra.mxu1 %v1663_v49 }
 0x689   : > { %v1794_v54 = vpop.f32.mrf.mxu1 }
 0x68a   : > { %v1928_v55 = vadd.f32 %v1927_v50, %v1794_v54 }
 0x68b   : > { %v1796_v57 = vpop.f32.mrf.mxu1 }
 0x68c   : > { %v1946_v58 = vadd.f32 %v1928_v55, %v2847_v12  ;;  %v1930_v59 = vadd.f32 %v1929_v51, %v1796_v57 }
 0x68d   : > { %v1798_v60 = vpop.f32.mrf.mxu1 }
 0x68e   : > { %2187 = vst [vmem:[%s2854_s29 + $0x40] sm:$0xff] %v1946_v58  ;;  %v1947_v1 = vadd.f32 %v1930_v59, %v2849_v19  ;;  %v1932_v61 = vadd.f32 %v1931_v52, %v1798_v60 }
 0x68f   : > { %v1800_v5 = vpop.f32.mrf.mxu1 }
 0x690   : > { %2188 = vst [vmem:[%s2854_s29 + $0x48] sm:$0xff] %v1947_v1  ;;  %v1948_v6 = vadd.f32 %v1932_v61, %v2847_v12  ;;  %v1934_v11 = vadd.f32 %v1933_v53, %v1800_v5 }
 0x691   : > { %v1804_v14 = vpop.f32.mrf.mxu1 }
 0x692   : > { %2189 = vst [vmem:[%s2854_s29 + $0x50] sm:$0xff] %v1948_v6  ;;  %v1949_v15 = vadd.f32 %v1934_v11, %v2849_v19  ;;  %v1938_v16 = vadd.f32 %v1937_v56, %v1804_v14 }
 0x693   : > { %v1806_v18 = vpop.f32.mrf.mxu1 }
 0x694   : > { %2190 = vst [vmem:[%s2854_s29 + $0x58] sm:$0xff] %v1949_v15  ;;  %v1950_v20 = vadd.f32 %v1938_v16, %v2847_v12  ;;  %v1940_v21 = vadd.f32 %v1939_v62, %v1806_v18 }
 0x695   : > { %v1808_v22 = vpop.f32.mrf.mxu1 }
 0x696   : > { %2191 = vst [vmem:[%s2854_s29 + $0x60] sm:$0xff] %v1950_v20  ;;  %v1951_v23 = vadd.f32 %v1940_v21, %v2849_v19  ;;  %v1942_v24 = vadd.f32 %v1941_v17, %v1808_v22 }
 0x697   : > { %v1810_v13 = vpop.f32.mrf.mxu1 }
 0x698   : > { %2192 = vst [vmem:[%s2854_s29 + $0x68] sm:$0xff] %v1951_v23  ;;  %v1952_v26 = vadd.f32 %v1942_v24, %v2847_v12  ;;  %v1944_v27 = vadd.f32 %v1943_v25, %v1810_v13 }
 0x69a   : > { %2193 = vst [vmem:[%s2854_s29 + $0x70] sm:$0xf] %v1952_v26  ;;  %v1953_v28 = vadd.f32 %v1944_v27, %v2849_v19 }
 0x69c   : > { %2194 = vst [vmem:[%s2854_s29 + $0x78] sm:$0xf] %v1953_v28 }
 0x69d PF: > { %s19_s30 = sadd.s32 1, %s2364_s30  }
 0x69e   : > { %p16_p4 = scmp.ge.s32.totalorder %s19_s30, 4  }
 0x6a0   :  { %18 = sbr.rel (!%p16_p4) target bundleno = 1 (0x1), region = 92 }

</bundles_post_ra>
